<compile_context>
chip_gen: v6e
topology: v6e:2x2x1
jax: 0.10.0
libtpu: 0.0.40
codegen_flags: <defaults>
</compile_context>

<pallas_src>
import functools

import jax
import jax.numpy as jnp
from jax.experimental import pallas as pl
from jax.experimental.pallas import tpu as pltpu


def _round_up(x, m):
    return ((x + m - 1) // m) * m


def _ffnn_kernel(num_hidden, log_predicted, policy, value, *refs):
    refs = list(refs)
    x_ref = refs.pop(0)
    w1_ref = refs.pop(0)
    b1_ref = refs.pop(0)

    cdt = w1_ref.dtype  # MXU input dtype (bf16 by default, f32 supported)

    # linear1 + ReLU (f32 accumulation)
    h = jnp.dot(x_ref[...].astype(cdt), w1_ref[...],
                preferred_element_type=jnp.float32)
    h = jnp.maximum(h + b1_ref[...], 0.0)
    # TODO(synk): dropout with p > 0 would need pltpu.prng_random_bits; the
    # module default p=0.0 (and eval mode) makes it the identity, so omitted.

    # hidden linears (num_layers - 2 of them)
    if num_hidden > 0:
        wh_ref = refs.pop(0)  # (num_hidden, H_pad, H_pad), pre-transposed
        bh_ref = refs.pop(0)  # (num_hidden, 1, H_pad), f32
        if num_hidden <= 8:
            for l in range(num_hidden):
                h = jnp.maximum(
                    jnp.dot(h.astype(cdt), wh_ref[l],
                            preferred_element_type=jnp.float32) + bh_ref[l],
                    0.0)
        else:
            def body(l, hh):
                return jnp.maximum(
                    jnp.dot(hh.astype(cdt), wh_ref[l],
                            preferred_element_type=jnp.float32) + bh_ref[l],
                    0.0)
            h = jax.lax.fori_loop(0, num_hidden, body, h, unroll=2)

    w_head_ref = refs.pop(0)  # (H_pad, OUT_PAD)  (dueling already folded in)
    b_head_ref = refs.pop(0)  # (1, OUT_PAD), f32
    out_ref = refs.pop(0)     # (TB, OUT_PAD)

    o = (jnp.dot(h.astype(cdt), w_head_ref[...],
                 preferred_element_type=jnp.float32) + b_head_ref[...])

    # Clamps only ever apply to the non-dueling head (matches the PyTorch
    # module); the wrapper forces these flags off when dueling=True.
    if log_predicted:
        o = jnp.clip(o, -13.0, 13.0)
    if policy:
        o = jnp.clip(o, -0.5, 2.0)
    if value:
        o = jnp.clip(o, -50.0, 50.0)

    out_ref[...] = o.astype(out_ref.dtype)


def init_ffnn_params(key, in_features, out_features, num_layers, hidden_size,
                     dueling=False):
    """Deterministic PyTorch-Linear-style init (uniform +-1/sqrt(fan_in))."""
    num_hidden = max(num_layers - 2, 0)
    params = {}

    def linear(k, fan_in, fan_out):
        kw, kb = jax.random.split(k)
        bound = 1.0 / jnp.sqrt(jnp.float32(fan_in))
        w = jax.random.uniform(kw, (fan_out, fan_in), jnp.float32, -bound, bound)
        b = jax.random.uniform(kb, (fan_out,), jnp.float32, -bound, bound)
        return w, b

    keys = jax.random.split(key, num_hidden + 3)
    params["w1"], params["b1"] = linear(keys[0], in_features, hidden_size)
    if num_hidden > 0:
        whs, bhs = [], []
        for i in range(num_hidden):
            w, b = linear(keys[1 + i], hidden_size, hidden_size)
            whs.append(w)
            bhs.append(b)
        params["wh"] = jnp.stack(whs)
        params["bh"] = jnp.stack(bhs)
    if dueling:
        params["wv"], params["bv"] = linear(keys[-2], hidden_size, 1)
        params["wa"], params["ba"] = linear(keys[-1], hidden_size, out_features)
    else:
        params["wf"], params["bf"] = linear(keys[-1], hidden_size, out_features)
    return params


def prepare_params(params, *, num_layers, out_features, dueling=False,
                   param_dtype=jnp.bfloat16):
    """One-time prep: transpose weights to (in, out), 2-D biases, zero-pad the
    hidden dim and head output to lane-aligned (multiple of 128) widths, fold
    the dueling V/A/mean algebra into the head, and cast weights to
    `param_dtype` (biases stay f32; they are added after f32 accumulation)."""
    num_hidden = max(num_layers - 2, 0)
    in_features = params["w1"].shape[1]
    hidden = params["w1"].shape[0]
    h_pad = _round_up(hidden, 128)
    out_pad = _round_up(out_features, 128)
    f32 = jnp.float32

    def pad_to(a, shape):
        return jnp.pad(a, [(0, s - d) for d, s in zip(a.shape, shape)])

    prep = {
        "w1": pad_to(jnp.asarray(params["w1"], f32).T,
                     (in_features, h_pad)).astype(param_dtype),
        "b1": pad_to(jnp.asarray(params["b1"], f32).reshape(1, -1), (1, h_pad)),
    }
    if num_hidden > 0:
        wh = jnp.transpose(jnp.asarray(params["wh"], f32), (0, 2, 1))
        prep["wh"] = pad_to(wh, (num_hidden, h_pad, h_pad)).astype(param_dtype)
        prep["bh"] = pad_to(jnp.asarray(params["bh"], f32)[:, None, :],
                            (num_hidden, 1, h_pad))

    if dueling:
        # Q = V + (A - mean(A)) is affine in h -> fold into a single head.
        wa_t = jnp.asarray(params["wa"], f32).T            # (H, out)
        wv_t = jnp.asarray(params["wv"], f32).T            # (H, 1)
        ba = jnp.asarray(params["ba"], f32)
        w_eff = wa_t - wa_t.mean(axis=1, keepdims=True) + wv_t
        b_eff = ba - jnp.mean(ba) + jnp.asarray(params["bv"], f32)[0]
    else:
        w_eff = jnp.asarray(params["wf"], f32).T
        b_eff = jnp.asarray(params["bf"], f32)

    prep["w_head"] = pad_to(w_eff, (h_pad, out_pad)).astype(param_dtype)
    prep["b_head"] = pad_to(b_eff.reshape(1, -1), (1, out_pad))
    return jax.device_put(prep)


@functools.partial(
    jax.jit,
    static_argnames=("num_layers", "out_features", "dueling", "log_predicted",
                     "policy", "value", "single_buffer_weights"),
)
def _ffnn_forward_jit(x, prep, *, num_layers, out_features, dueling,
                      log_predicted, policy, value, single_buffer_weights):
    num_hidden = max(num_layers - 2, 0)
    batch, in_features = x.shape
    h_pad = prep["w1"].shape[1]
    out_pad = prep["w_head"].shape[1]

    # The PyTorch module never clamps the dueling output.
    if dueling:
        log_predicted = policy = value = False

    # Batch tiling: >= 2 grid steps whenever batch >= 16 so the "parallel"
    # axis can shard across both v7x TensorCores; tile near 512 rows and
    # keep worst-case padding small.
    n_tiles = max(2, pl.cdiv(batch, 512)) if batch >= 16 else 1
    tb = _round_up(pl.cdiv(batch, n_tiles), 8)
    batch_pad = n_tiles * tb
    if batch_pad != batch:
        x = jnp.pad(x, ((0, batch_pad - batch), (0, 0)))
    grid = (n_tiles,)

    def wspec(shape, imap):
        # Grid-invariant weight/bias: a single resident buffer is enough.
        if single_buffer_weights:
            return pl.BlockSpec(shape, imap, pipeline_mode=pl.Buffered(1))
        return pl.BlockSpec(shape, imap)

    inputs = [x, prep["w1"], prep["b1"]]
    in_specs = [
        pl.BlockSpec((tb, in_features), lambda i: (i, 0)),
        wspec((in_features, h_pad), lambda i: (0, 0)),
        wspec((1, h_pad), lambda i: (0, 0)),
    ]
    if num_hidden > 0:
        inputs += [prep["wh"], prep["bh"]]
        in_specs += [
            wspec((num_hidden, h_pad, h_pad), lambda i: (0, 0, 0)),
            wspec((num_hidden, 1, h_pad), lambda i: (0, 0, 0)),
        ]
    inputs += [prep["w_head"], prep["b_head"]]
    in_specs += [
        wspec((h_pad, out_pad), lambda i: (0, 0)),
        wspec((1, out_pad), lambda i: (0, 0)),
    ]
    out_specs = pl.BlockSpec((tb, out_pad), lambda i: (i, 0))

    # VMEM budget: resident weights (x1 or x2 buffers) + double-buffered
    # activation tiles + live intermediates + headroom, capped per-generation.
    # TODO(synk): if weight_bytes exceeds ~45 MiB on v7x, switch to a
    # streamed-weights layout (per-layer HBM tiles) instead of all-resident.
    weight_bytes = sum(int(a.size) * a.dtype.itemsize for a in inputs[1:])
    wt_buf = 1 if single_buffer_weights else 2
    act_bytes = 2 * (tb * in_features * x.dtype.itemsize + tb * out_pad * 4)
    vmem_est = wt_buf * weight_bytes + act_bytes + 2 * tb * h_pad * 4 + (4 << 20)
    try:
        vmem_cap = int(0.85 * pltpu.get_tpu_info().vmem_capacity_bytes)
    except Exception:
        vmem_cap = 56 << 20  # conservative: fits v7x's 64 MiB physical VMEM
    vmem_bytes = min(max(vmem_est, 32 << 20), vmem_cap)

    flops = 2 * batch_pad * (in_features * h_pad
                             + num_hidden * h_pad * h_pad
                             + h_pad * out_pad)
    bytes_accessed = (sum(int(a.size) * a.dtype.itemsize for a in inputs)
                      + batch_pad * out_pad * 4)

    kernel = functools.partial(_ffnn_kernel, num_hidden, log_predicted,
                               policy, value)
    out = pl.pallas_call(
        kernel,
        out_shape=jax.ShapeDtypeStruct((batch_pad, out_pad), jnp.float32),
        grid=grid,
        in_specs=in_specs,
        out_specs=out_specs,
        compiler_params=pltpu.CompilerParams(
            dimension_semantics=("parallel",),
            vmem_limit_bytes=vmem_bytes),
        cost_estimate=pl.CostEstimate(flops=flops, transcendentals=0,
                                      bytes_accessed=bytes_accessed),
    )(*inputs)
    # TODO(synk): for tiny out_features a masked (tb, out_features) store may
    # beat the 128-wide padded slab + this slice; benchmark per generation.
    return out[:batch, :out_features]


def ffnn_forward(x, prep, *, num_layers, out_features, dueling=False,
                 log_predicted=False, policy=False, value=False):
    kw = dict(num_layers=num_layers, out_features=out_features,
              dueling=dueling, log_predicted=log_predicted, policy=policy,
              value=value)
    try:
        return _ffnn_forward_jit(x, prep, single_buffer_weights=True, **kw)
    except Exception:
        # pl.Buffered(1) not supported by this jax/Mosaic build -> fall back
        # to default double-buffered weight specs.
        return _ffnn_forward_jit(x, prep, single_buffer_weights=False, **kw)


def _reference(x, params, *, num_layers, dueling, log_predicted, policy, value):
    h = jnp.maximum(x @ params["w1"].T + params["b1"], 0.0)
    for l in range(max(num_layers - 2, 0)):
        h = jnp.maximum(h @ params["wh"][l].T + params["bh"][l], 0.0)
    if dueling:
        V = h @ params["wv"].T + params["bv"]
        A = h @ params["wa"].T + params["ba"]
        return V + (A - A.mean(axis=1, keepdims=True))
    o = h @ params["wf"].T + params["bf"]
    if log_predicted:
        o = jnp.clip(o, -13.0, 13.0)
    if policy:
        o = jnp.clip(o, -0.5, 2.0)
    if value:
        o = jnp.clip(o, -50.0, 50.0)
    return o


if __name__ == "__main__":
    key = jax.random.PRNGKey(0)
    k_x, k_x3, k_p1, k_p2, k_p3 = jax.random.split(key, 5)

    batch, in_features, hidden_size, out_features, num_layers = 4, 16, 32, 8, 4
    x = jax.random.normal(k_x, (batch, in_features), jnp.float32)

    # Config 1: standard head + value clamp, bf16 weights (MXU-native path).
    p1 = init_ffnn_params(k_p1, in_features, out_features, num_layers,
                          hidden_size, dueling=False)
    prep1 = prepare_params(p1, num_layers=num_layers,
                           out_features=out_features, dueling=False,
                           param_dtype=jnp.bfloat16)
    y1 = ffnn_forward(x, prep1, num_layers=num_layers,
                      out_features=out_features, value=True)
    jax.block_until_ready(y1)
    r1 = _reference(x, p1, num_layers=num_layers, dueling=False,
                    log_predicted=False, policy=False, value=True)

    # Config 2: dueling head (folded into head weights at prep time), f32
    # params so the fold algebra can be checked to tight tolerance.
    p2 = init_ffnn_params(k_p2, in_features, out_features, num_layers,
                          hidden_size, dueling=True)
    prep2 = prepare_params(p2, num_layers=num_layers,
                           out_features=out_features, dueling=True,
                           param_dtype=jnp.float32)
    y2 = ffnn_forward(x, prep2, num_layers=num_layers,
                      out_features=out_features, dueling=True)
    jax.block_until_ready(y2)
    r2 = _reference(x, p2, num_layers=num_layers, dueling=True,
                    log_predicted=False, policy=False, value=False)

    # Config 3: large batch (multi-step "parallel" grid), 12 layers
    # (exercises the unrolled lax.fori_loop path), log_predicted clamp, bf16.
    batch3, num_layers3 = 1024, 12
    x3 = jax.random.normal(k_x3, (batch3, in_features), jnp.float32)
    p3 = init_ffnn_params(k_p3, in_features, out_features, num_layers3,
                          hidden_size, dueling=False)
    prep3 = prepare_params(p3, num_layers=num_layers3,
                           out_features=out_features, dueling=False,
                           param_dtype=jnp.bfloat16)
    y3 = ffnn_forward(x3, prep3, num_layers=num_layers3,
                      out_features=out_features, log_predicted=True)
    jax.block_until_ready(y3)
    r3 = _reference(x3, p3, num_layers=num_layers3, dueling=False,
                    log_predicted=True, policy=False, value=False)

    assert y1.shape == (batch, out_features)
    assert y2.shape == (batch, out_features)
    assert y3.shape == (batch3, out_features)
    # bf16 weights -> relaxed tolerance vs. f32 reference; f32 dueling tight.
    assert jnp.allclose(y1, r1, atol=5e-2, rtol=5e-2), float(jnp.max(jnp.abs(y1 - r1)))
    assert jnp.allclose(y2, r2, atol=1e-4, rtol=1e-4), float(jnp.max(jnp.abs(y2 - r2)))
    assert jnp.allclose(y3, r3, atol=5e-2, rtol=5e-2), float(jnp.max(jnp.abs(y3 - r3)))
    print("KERNEL_OK")
</pallas_src>

<mosaic_0001>
module attributes {stable_mosaic.version = 11 : i64} {
  func.func @_ffnn_kernel(%arg0: i32, %arg1: memref<8x16xf32, #tpu.memory_space<vmem>>, %arg2: memref<16x128xbf16, #tpu.memory_space<vmem>>, %arg3: memref<1x128xf32, #tpu.memory_space<vmem>>, %arg4: memref<2x128x128xbf16, #tpu.memory_space<vmem>>, %arg5: memref<2x1x128xf32, #tpu.memory_space<vmem>>, %arg6: memref<128x128xbf16, #tpu.memory_space<vmem>>, %arg7: memref<1x128xf32, #tpu.memory_space<vmem>>, %arg8: memref<8x128xf32, #tpu.memory_space<vmem>>) attributes {dimension_semantics = [#tpu.dimension_semantics<parallel>], iteration_bounds = array<i64: 1>, scalar_prefetch = 0 : i64, scratch_operands = 0 : i64, tpu.core_type = #tpu.core_type<tc>, window_params = [{transform_indices = @transform_0, window_bounds = array<i64: 8, 16>}, {pipeline_mode = #tpu.pipeline_mode<synchronous>, transform_indices = @transform_1, window_bounds = array<i64: 16, 128>}, {pipeline_mode = #tpu.pipeline_mode<synchronous>, transform_indices = @transform_2, window_bounds = array<i64: 1, 128>}, {pipeline_mode = #tpu.pipeline_mode<synchronous>, transform_indices = @transform_3, window_bounds = array<i64: 2, 128, 128>}, {pipeline_mode = #tpu.pipeline_mode<synchronous>, transform_indices = @transform_4, window_bounds = array<i64: 2, 1, 128>}, {pipeline_mode = #tpu.pipeline_mode<synchronous>, transform_indices = @transform_5, window_bounds = array<i64: 128, 128>}, {pipeline_mode = #tpu.pipeline_mode<synchronous>, transform_indices = @transform_6, window_bounds = array<i64: 1, 128>}, {transform_indices = @transform_7, window_bounds = array<i64: 8, 128>}]} {
    %c0 = arith.constant 0 : index
    %c0_0 = arith.constant 0 : index
    %0 = vector.load %arg1[%c0, %c0_0] : memref<8x16xf32, #tpu.memory_space<vmem>>, vector<8x16xf32>
    %1 = arith.truncf %0 : vector<8x16xf32> to vector<8x16xbf16>
    %c0_1 = arith.constant 0 : index
    %c0_2 = arith.constant 0 : index
    %2 = vector.load %arg2[%c0_1, %c0_2] : memref<16x128xbf16, #tpu.memory_space<vmem>>, vector<16x128xbf16>
    %cst = arith.constant dense<0.000000e+00> : vector<8x128xf32>
    %3 = tpu.matmul %1, %2, %cst {dimension_numbers = #tpu.dot_dimension_numbers<[1], [0], [0], [1], [0, 0, 1, 1], [], []>} : vector<8x16xbf16>, vector<16x128xbf16>, vector<8x128xf32> -> vector<8x128xf32>
    %c0_3 = arith.constant 0 : index
    %c0_4 = arith.constant 0 : index
    %4 = vector.load %arg3[%c0_3, %c0_4] : memref<1x128xf32, #tpu.memory_space<vmem>>, vector<1x128xf32>
    %5 = vector.broadcast %4 : vector<1x128xf32> to vector<8x128xf32>
    %6 = arith.addf %3, %5 : vector<8x128xf32>
    %cst_5 = arith.constant 0.000000e+00 : f32
    %7 = vector.broadcast %cst_5 : f32 to vector<8x128xf32>
    %8 = arith.maximumf %6, %7 : vector<8x128xf32>
    %9 = arith.truncf %8 : vector<8x128xf32> to vector<8x128xbf16>
    %c0_6 = arith.constant 0 : index
    %c0_7 = arith.constant 0 : index
    %c0_8 = arith.constant 0 : index
    %10 = vector.load %arg4[%c0_6, %c0_7, %c0_8] : memref<2x128x128xbf16, #tpu.memory_space<vmem>>, vector<1x128x128xbf16>
    %11 = vector.shape_cast %10 : vector<1x128x128xbf16> to vector<128x128xbf16>
    %cst_9 = arith.constant dense<0.000000e+00> : vector<8x128xf32>
    %12 = tpu.matmul %9, %11, %cst_9 {dimension_numbers = #tpu.dot_dimension_numbers<[1], [0], [0], [1], [0, 0, 1, 1], [], []>} : vector<8x128xbf16>, vector<128x128xbf16>, vector<8x128xf32> -> vector<8x128xf32>
    %c0_10 = arith.constant 0 : index
    %c0_11 = arith.constant 0 : index
    %c0_12 = arith.constant 0 : index
    %13 = vector.load %arg5[%c0_10, %c0_11, %c0_12] : memref<2x1x128xf32, #tpu.memory_space<vmem>>, vector<1x1x128xf32>
    %14 = vector.shape_cast %13 : vector<1x1x128xf32> to vector<1x128xf32>
    %15 = vector.broadcast %14 : vector<1x128xf32> to vector<8x128xf32>
    %16 = arith.addf %12, %15 : vector<8x128xf32>
    %cst_13 = arith.constant 0.000000e+00 : f32
    %17 = vector.broadcast %cst_13 : f32 to vector<8x128xf32>
    %18 = arith.maximumf %16, %17 : vector<8x128xf32>
    %19 = arith.truncf %18 : vector<8x128xf32> to vector<8x128xbf16>
    %c1 = arith.constant 1 : index
    %c0_14 = arith.constant 0 : index
    %c0_15 = arith.constant 0 : index
    %20 = vector.load %arg4[%c1, %c0_14, %c0_15] : memref<2x128x128xbf16, #tpu.memory_space<vmem>>, vector<1x128x128xbf16>
    %21 = vector.shape_cast %20 : vector<1x128x128xbf16> to vector<128x128xbf16>
    %cst_16 = arith.constant dense<0.000000e+00> : vector<8x128xf32>
    %22 = tpu.matmul %19, %21, %cst_16 {dimension_numbers = #tpu.dot_dimension_numbers<[1], [0], [0], [1], [0, 0, 1, 1], [], []>} : vector<8x128xbf16>, vector<128x128xbf16>, vector<8x128xf32> -> vector<8x128xf32>
    %c1_17 = arith.constant 1 : index
    %c0_18 = arith.constant 0 : index
    %c0_19 = arith.constant 0 : index
    %23 = vector.load %arg5[%c1_17, %c0_18, %c0_19] : memref<2x1x128xf32, #tpu.memory_space<vmem>>, vector<1x1x128xf32>
    %24 = vector.shape_cast %23 : vector<1x1x128xf32> to vector<1x128xf32>
    %25 = vector.broadcast %24 : vector<1x128xf32> to vector<8x128xf32>
    %26 = arith.addf %22, %25 : vector<8x128xf32>
    %cst_20 = arith.constant 0.000000e+00 : f32
    %27 = vector.broadcast %cst_20 : f32 to vector<8x128xf32>
    %28 = arith.maximumf %26, %27 : vector<8x128xf32>
    %29 = arith.truncf %28 : vector<8x128xf32> to vector<8x128xbf16>
    %c0_21 = arith.constant 0 : index
    %c0_22 = arith.constant 0 : index
    %30 = vector.load %arg6[%c0_21, %c0_22] : memref<128x128xbf16, #tpu.memory_space<vmem>>, vector<128x128xbf16>
    %cst_23 = arith.constant dense<0.000000e+00> : vector<8x128xf32>
    %31 = tpu.matmul %29, %30, %cst_23 {dimension_numbers = #tpu.dot_dimension_numbers<[1], [0], [0], [1], [0, 0, 1, 1], [], []>} : vector<8x128xbf16>, vector<128x128xbf16>, vector<8x128xf32> -> vector<8x128xf32>
    %c0_24 = arith.constant 0 : index
    %c0_25 = arith.constant 0 : index
    %32 = vector.load %arg7[%c0_24, %c0_25] : memref<1x128xf32, #tpu.memory_space<vmem>>, vector<1x128xf32>
    %33 = vector.broadcast %32 : vector<1x128xf32> to vector<8x128xf32>
    %34 = arith.addf %31, %33 : vector<8x128xf32>
    %cst_26 = arith.constant -5.000000e+01 : f32
    %cst_27 = arith.constant 5.000000e+01 : f32
    %35 = vector.broadcast %cst_26 : f32 to vector<8x128xf32>
    %36 = arith.maximumf %35, %34 : vector<8x128xf32>
    %37 = vector.broadcast %cst_27 : f32 to vector<8x128xf32>
    %38 = arith.minimumf %37, %36 : vector<8x128xf32>
    %c0_28 = arith.constant 0 : index
    %c0_29 = arith.constant 0 : index
    %39 = vector.load %arg8[%c0_28, %c0_29] : memref<8x128xf32, #tpu.memory_space<vmem>>, vector<8x128xf32>
    tpu.vector_store %arg8[%c0_28, %c0_29], %38 {strides = array<i32>} : memref<8x128xf32, #tpu.memory_space<vmem>>, vector<8x128xf32>,
    return
  }
  func.func @transform_0(%arg0: i32) -> (i32, i32) {
    %c0_i32 = arith.constant 0 : i32
    %c0_i32_0 = arith.constant 0 : i32
    return %arg0, %c0_i32 : i32, i32
  }
  func.func @transform_1(%arg0: i32) -> (i32, i32) {
    %c0_i32 = arith.constant 0 : i32
    %c0_i32_0 = arith.constant 0 : i32
    %c0_i32_1 = arith.constant 0 : i32
    return %c0_i32, %c0_i32_0 : i32, i32
  }
  func.func @transform_2(%arg0: i32) -> (i32, i32) {
    %c0_i32 = arith.constant 0 : i32
    %c0_i32_0 = arith.constant 0 : i32
    %c0_i32_1 = arith.constant 0 : i32
    return %c0_i32, %c0_i32_0 : i32, i32
  }
  func.func @transform_3(%arg0: i32) -> (i32, i32, i32) {
    %c0_i32 = arith.constant 0 : i32
    %c0_i32_0 = arith.constant 0 : i32
    %c0_i32_1 = arith.constant 0 : i32
    %c0_i32_2 = arith.constant 0 : i32
    return %c0_i32, %c0_i32_0, %c0_i32_1 : i32, i32, i32
  }
  func.func @transform_4(%arg0: i32) -> (i32, i32, i32) {
    %c0_i32 = arith.constant 0 : i32
    %c0_i32_0 = arith.constant 0 : i32
    %c0_i32_1 = arith.constant 0 : i32
    %c0_i32_2 = arith.constant 0 : i32
    return %c0_i32, %c0_i32_0, %c0_i32_1 : i32, i32, i32
  }
  func.func @transform_5(%arg0: i32) -> (i32, i32) {
    %c0_i32 = arith.constant 0 : i32
    %c0_i32_0 = arith.constant 0 : i32
    %c0_i32_1 = arith.constant 0 : i32
    return %c0_i32, %c0_i32_0 : i32, i32
  }
  func.func @transform_6(%arg0: i32) -> (i32, i32) {
    %c0_i32 = arith.constant 0 : i32
    %c0_i32_0 = arith.constant 0 : i32
    %c0_i32_1 = arith.constant 0 : i32
    return %c0_i32, %c0_i32_0 : i32, i32
  }
  func.func @transform_7(%arg0: i32) -> (i32, i32) {
    %c0_i32 = arith.constant 0 : i32
    %c0_i32_0 = arith.constant 0 : i32
    return %arg0, %c0_i32 : i32, i32
  }
}

module attributes {stable_mosaic.version = 11 : i64} {
  func.func @_ffnn_kernel(%arg0: i32, %arg1: memref<8x16xf32, #tpu.memory_space<vmem>>, %arg2: memref<16x128xbf16, #tpu.memory_space<vmem>>, %arg3: memref<1x128xf32, #tpu.memory_space<vmem>>, %arg4: memref<2x128x128xbf16, #tpu.memory_space<vmem>>, %arg5: memref<2x1x128xf32, #tpu.memory_space<vmem>>, %arg6: memref<128x128xbf16, #tpu.memory_space<vmem>>, %arg7: memref<1x128xf32, #tpu.memory_space<vmem>>, %arg8: memref<8x128xf32, #tpu.memory_space<vmem>>) attributes {dimension_semantics = [#tpu.dimension_semantics<parallel>], iteration_bounds = array<i64: 1>, scalar_prefetch = 0 : i64, scratch_operands = 0 : i64, tpu.core_type = #tpu.core_type<tc>, window_params = [{transform_indices = @transform_0, window_bounds = array<i64: 8, 16>}, {pipeline_mode = #tpu.pipeline_mode<synchronous>, transform_indices = @transform_1, window_bounds = array<i64: 16, 128>}, {pipeline_mode = #tpu.pipeline_mode<synchronous>, transform_indices = @transform_2, window_bounds = array<i64: 1, 128>}, {pipeline_mode = #tpu.pipeline_mode<synchronous>, transform_indices = @transform_3, window_bounds = array<i64: 2, 128, 128>}, {pipeline_mode = #tpu.pipeline_mode<synchronous>, transform_indices = @transform_4, window_bounds = array<i64: 2, 1, 128>}, {pipeline_mode = #tpu.pipeline_mode<synchronous>, transform_indices = @transform_5, window_bounds = array<i64: 128, 128>}, {pipeline_mode = #tpu.pipeline_mode<synchronous>, transform_indices = @transform_6, window_bounds = array<i64: 1, 128>}, {transform_indices = @transform_7, window_bounds = array<i64: 8, 128>}]} {
    %c0 = arith.constant 0 : index
    %c0_0 = arith.constant 0 : index
    %0 = vector.load %arg1[%c0, %c0_0] : memref<8x16xf32, #tpu.memory_space<vmem>>, vector<8x16xf32>
    %1 = arith.truncf %0 : vector<8x16xf32> to vector<8x16xbf16>
    %c0_1 = arith.constant 0 : index
    %c0_2 = arith.constant 0 : index
    %2 = vector.load %arg2[%c0_1, %c0_2] : memref<16x128xbf16, #tpu.memory_space<vmem>>, vector<16x128xbf16>
    %cst = arith.constant dense<0.000000e+00> : vector<8x128xf32>
    %3 = tpu.matmul %1, %2, %cst {dimension_numbers = #tpu.dot_dimension_numbers<[1], [0], [0], [1], [0, 0, 1, 1], [], []>} : vector<8x16xbf16>, vector<16x128xbf16>, vector<8x128xf32> -> vector<8x128xf32>
    %c0_3 = arith.constant 0 : index
    %c0_4 = arith.constant 0 : index
    %4 = vector.load %arg3[%c0_3, %c0_4] : memref<1x128xf32, #tpu.memory_space<vmem>>, vector<1x128xf32>
    %5 = vector.broadcast %4 : vector<1x128xf32> to vector<8x128xf32>
    %6 = arith.addf %3, %5 : vector<8x128xf32>
    %cst_5 = arith.constant 0.000000e+00 : f32
    %7 = vector.broadcast %cst_5 : f32 to vector<8x128xf32>
    %8 = arith.maximumf %6, %7 : vector<8x128xf32>
    %9 = arith.truncf %8 : vector<8x128xf32> to vector<8x128xbf16>
    %c0_6 = arith.constant 0 : index
    %c0_7 = arith.constant 0 : index
    %c0_8 = arith.constant 0 : index
    %10 = vector.load %arg4[%c0_6, %c0_7, %c0_8] : memref<2x128x128xbf16, #tpu.memory_space<vmem>>, vector<1x128x128xbf16>
    %11 = vector.shape_cast %10 : vector<1x128x128xbf16> to vector<128x128xbf16>
    %cst_9 = arith.constant dense<0.000000e+00> : vector<8x128xf32>
    %12 = tpu.matmul %9, %11, %cst_9 {dimension_numbers = #tpu.dot_dimension_numbers<[1], [0], [0], [1], [0, 0, 1, 1], [], []>} : vector<8x128xbf16>, vector<128x128xbf16>, vector<8x128xf32> -> vector<8x128xf32>
    %c0_10 = arith.constant 0 : index
    %c0_11 = arith.constant 0 : index
    %c0_12 = arith.constant 0 : index
    %13 = vector.load %arg5[%c0_10, %c0_11, %c0_12] : memref<2x1x128xf32, #tpu.memory_space<vmem>>, vector<1x1x128xf32>
    %14 = vector.shape_cast %13 : vector<1x1x128xf32> to vector<1x128xf32>
    %15 = vector.broadcast %14 : vector<1x128xf32> to vector<8x128xf32>
    %16 = arith.addf %12, %15 : vector<8x128xf32>
    %cst_13 = arith.constant 0.000000e+00 : f32
    %17 = vector.broadcast %cst_13 : f32 to vector<8x128xf32>
    %18 = arith.maximumf %16, %17 : vector<8x128xf32>
    %19 = arith.truncf %18 : vector<8x128xf32> to vector<8x128xbf16>
    %c1 = arith.constant 1 : index
    %c0_14 = arith.constant 0 : index
    %c0_15 = arith.constant 0 : index
    %20 = vector.load %arg4[%c1, %c0_14, %c0_15] : memref<2x128x128xbf16, #tpu.memory_space<vmem>>, vector<1x128x128xbf16>
    %21 = vector.shape_cast %20 : vector<1x128x128xbf16> to vector<128x128xbf16>
    %cst_16 = arith.constant dense<0.000000e+00> : vector<8x128xf32>
    %22 = tpu.matmul %19, %21, %cst_16 {dimension_numbers = #tpu.dot_dimension_numbers<[1], [0], [0], [1], [0, 0, 1, 1], [], []>} : vector<8x128xbf16>, vector<128x128xbf16>, vector<8x128xf32> -> vector<8x128xf32>
    %c1_17 = arith.constant 1 : index
    %c0_18 = arith.constant 0 : index
    %c0_19 = arith.constant 0 : index
    %23 = vector.load %arg5[%c1_17, %c0_18, %c0_19] : memref<2x1x128xf32, #tpu.memory_space<vmem>>, vector<1x1x128xf32>
    %24 = vector.shape_cast %23 : vector<1x1x128xf32> to vector<1x128xf32>
    %25 = vector.broadcast %24 : vector<1x128xf32> to vector<8x128xf32>
    %26 = arith.addf %22, %25 : vector<8x128xf32>
    %cst_20 = arith.constant 0.000000e+00 : f32
    %27 = vector.broadcast %cst_20 : f32 to vector<8x128xf32>
    %28 = arith.maximumf %26, %27 : vector<8x128xf32>
    %29 = arith.truncf %28 : vector<8x128xf32> to vector<8x128xbf16>
    %c0_21 = arith.constant 0 : index
    %c0_22 = arith.constant 0 : index
    %30 = vector.load %arg6[%c0_21, %c0_22] : memref<128x128xbf16, #tpu.memory_space<vmem>>, vector<128x128xbf16>
    %cst_23 = arith.constant dense<0.000000e+00> : vector<8x128xf32>
    %31 = tpu.matmul %29, %30, %cst_23 {dimension_numbers = #tpu.dot_dimension_numbers<[1], [0], [0], [1], [0, 0, 1, 1], [], []>} : vector<8x128xbf16>, vector<128x128xbf16>, vector<8x128xf32> -> vector<8x128xf32>
    %c0_24 = arith.constant 0 : index
    %c0_25 = arith.constant 0 : index
    %32 = vector.load %arg7[%c0_24, %c0_25] : memref<1x128xf32, #tpu.memory_space<vmem>>, vector<1x128xf32>
    %33 = vector.broadcast %32 : vector<1x128xf32> to vector<8x128xf32>
    %34 = arith.addf %31, %33 : vector<8x128xf32>
    %cst_26 = arith.constant -5.000000e+01 : f32
    %cst_27 = arith.constant 5.000000e+01 : f32
    %35 = vector.broadcast %cst_26 : f32 to vector<8x128xf32>
    %36 = arith.maximumf %35, %34 : vector<8x128xf32>
    %37 = vector.broadcast %cst_27 : f32 to vector<8x128xf32>
    %38 = arith.minimumf %37, %36 : vector<8x128xf32>
    %c0_28 = arith.constant 0 : index
    %c0_29 = arith.constant 0 : index
    %39 = vector.load %arg8[%c0_28, %c0_29] : memref<8x128xf32, #tpu.memory_space<vmem>>, vector<8x128xf32>
    tpu.vector_store %arg8[%c0_28, %c0_29], %38 {strides = array<i32>} : memref<8x128xf32, #tpu.memory_space<vmem>>, vector<8x128xf32>,
    return
  }
  func.func @transform_0(%arg0: i32) -> (i32, i32) {
    %c0_i32 = arith.constant 0 : i32
    %c0_i32_0 = arith.constant 0 : i32
    return %arg0, %c0_i32 : i32, i32
  }
  func.func @transform_1(%arg0: i32) -> (i32, i32) {
    %c0_i32 = arith.constant 0 : i32
    %c0_i32_0 = arith.constant 0 : i32
    %c0_i32_1 = arith.constant 0 : i32
    return %c0_i32, %c0_i32_0 : i32, i32
  }
  func.func @transform_2(%arg0: i32) -> (i32, i32) {
    %c0_i32 = arith.constant 0 : i32
    %c0_i32_0 = arith.constant 0 : i32
    %c0_i32_1 = arith.constant 0 : i32
    return %c0_i32, %c0_i32_0 : i32, i32
  }
  func.func @transform_3(%arg0: i32) -> (i32, i32, i32) {
    %c0_i32 = arith.constant 0 : i32
    %c0_i32_0 = arith.constant 0 : i32
    %c0_i32_1 = arith.constant 0 : i32
    %c0_i32_2 = arith.constant 0 : i32
    return %c0_i32, %c0_i32_0, %c0_i32_1 : i32, i32, i32
  }
  func.func @transform_4(%arg0: i32) -> (i32, i32, i32) {
    %c0_i32 = arith.constant 0 : i32
    %c0_i32_0 = arith.constant 0 : i32
    %c0_i32_1 = arith.constant 0 : i32
    %c0_i32_2 = arith.constant 0 : i32
    return %c0_i32, %c0_i32_0, %c0_i32_1 : i32, i32, i32
  }
  func.func @transform_5(%arg0: i32) -> (i32, i32) {
    %c0_i32 = arith.constant 0 : i32
    %c0_i32_0 = arith.constant 0 : i32
    %c0_i32_1 = arith.constant 0 : i32
    return %c0_i32, %c0_i32_0 : i32, i32
  }
  func.func @transform_6(%arg0: i32) -> (i32, i32) {
    %c0_i32 = arith.constant 0 : i32
    %c0_i32_0 = arith.constant 0 : i32
    %c0_i32_1 = arith.constant 0 : i32
    return %c0_i32, %c0_i32_0 : i32, i32
  }
  func.func @transform_7(%arg0: i32) -> (i32, i32) {
    %c0_i32 = arith.constant 0 : i32
    %c0_i32_0 = arith.constant 0 : i32
    return %arg0, %c0_i32 : i32, i32
  }
}

</mosaic_0001>

<bundles_post_ra>
// kernel: _ffnn_forward_jit.1
= control target key start
LH: loop header
LB: loop body
LE: loop exit
PB: predicated region body
PF: predicated region fallthrough
CT: control target
= control target key end

     0   :  { %12 = vsyncpa [#allocation3], 0  ;;  %s774_s0 = inlined_call_operand.vmem [shape: f32[8,16], index: 0, kind: input, shape index: {}]   ;;  %s775_s1 = inlined_call_operand.vmem [shape: bf16[16,128], index: 1, kind: input, shape index: {}]   ;;  %s776_s2 = inlined_call_operand.vmem [shape: f32[1,128], index: 2, kind: input, shape index: {}]   ;;  %s777_s3 = inlined_call_operand.hbm [shape: bf16[2,128,128], index: 3, kind: input, shape index: {}]   ;;  %s778_s4 = inlined_call_operand.vmem [shape: f32[2,1,128], index: 4, kind: input, shape index: {}]   ;;  %s779_s5 = inlined_call_operand.hbm [shape: bf16[128,128], index: 5, kind: input, shape index: {}]   ;;  %s780_s6 = inlined_call_operand.vmem [shape: f32[1,128], index: 6, kind: input, shape index: {}]   ;;  %s781_s7 = inlined_call_operand.vmem [shape: f32[8,128], index: 7, kind: output, shape index: {}]  }
   0x1   :  { %13 = vsyncpa [#allocation5], 0  ;;  %s668_s24 = smov [#allocation2]  }
   0x2   :  { %s25_s25 = sshll.u32 %s668_s24, 4  ;;  %s26_s25 = int_to_ptr.vmem [resolvable:$true] %s25_s25 }
   0x3   :  { %s632_s26 = scalar_lea.vmem %s26_s25, 2048  ;;  %p637_p1 = scmp.lt.s32.totalorder %s26_s25, %s26_s25 }
   0x4   :  { %p633_p0 = scmp.ne.s32.totalorder %s26_s25, %s632_s26  ;;  %p638_p2 = scmp.lt.s32.totalorder %s632_s26, %s632_s26 }
   0x6   :  { %p639_p3 = por %p638_p2, %p637_p1 }
   0x8   :  { %p640_p4 = pnand %p639_p3, %p633_p0 }
   0xa   :  { %643 = shalt.err (!%p640_p4)
}
   0xb   :  { %s669_s27 = smov 64   ;;  %s670_s28 = smov 4  }
   0xc   :  { %31 = dma.hbm_to_vmem [thread:$0]  %s777_s3, 2048, %s26_s25, [#allocation3], %s669_s27, %s669_s27, %s670_s28  }
   0xd   :  { %s671_s8 = smov [#allocation4]  }
   0xe   :  { %s39_s9 = sshll.u32 %s671_s8, 4  ;;  %s40_s9 = int_to_ptr.vmem [resolvable:$true] %s39_s9 }
   0xf   :  { %s652_s10 = scalar_lea.vmem %s40_s9, 1024  ;;  %p657_p6 = scmp.lt.s32.totalorder %s40_s9, %s40_s9 }
  0x10   :  { %p653_p5 = scmp.ne.s32.totalorder %s40_s9, %s652_s10  ;;  %p658_p7 = scmp.lt.s32.totalorder %s652_s10, %s652_s10 }
  0x12   :  { %p659_p8 = por %p658_p7, %p657_p6 }
  0x14   :  { %p660_p9 = pnand %p659_p8, %p653_p5 }
  0x16   :  { %663 = shalt.err (!%p660_p9)
}
  0x17   :  { %45 = dma.hbm_to_vmem [thread:$0]  %s779_s5, 1024, %s40_s9, [#allocation5], %s669_s27, %s669_s27, %s670_s28  }
  0x18   :  { %664 = dma.done.wait [#allocation3], 2048  }
  0x19   :  { %665 = vsyncadd [#allocation3], 4294965248 }
  0x1a   :  { %666 = dma.done.wait [#allocation5], 1024  }
  0x1b   :  { %667 = vsyncadd [#allocation5], 4294966272  ;;  %v672_v0 = vmov 0.0   ;;  %vm673_vm0 = vmmov 0   ;;  %v599_v1 = vld [vmem:[%s775_s1] sm:$0xff]   ;;  %vm72_vm1 = vcmask 130048  }
  0x1c   :  { %527 = vmatprep.subr.bf16.mxu0 %v672_v0  ;;  %529 = vmatprep.mubr.msk.bf16.mxu0 %vm673_vm0, %v672_v0  ;;  %v55_v2 = vld [vmem:[%s774_s0] sm:$0xff]  ;;  %v600_v4 = vld [vmem:[#allocation2 + $0x38] sm:$0xff]   ;;  %v601_v5 = vld [vmem:[#allocation2 + $0x30] sm:$0xff]  }
  0x1d   :  { %533 = vmatprep.subr.bf16.mxu1 %v672_v0  ;;  %549 = vmatprep.mubr.msk.bf16.mxu1 %vm673_vm0, %v672_v0  ;;  %v56_v3 = vpack.c.bf16 %v55_v2, %v55_v2  ;;  %v602_v6 = vld [vmem:[#allocation2 + $0x28] sm:$0xff]   ;;  %v603_v7 = vld [vmem:[#allocation2 + $0x20] sm:$0xff]   ;;  %v604_v8 = vld [vmem:[#allocation2 + $0x18] sm:$0xff]  }
  0x1e   :  { %528 = vmatpush3.bf16.msra.mxu0 %v599_v1  ;;  %534 = vmatpush3.bf16.msra.mxu1 %v600_v4  ;;  %v605_v9 = vld [vmem:[#allocation2 + $0x10] sm:$0xff]   ;;  %v606_v10 = vld [vmem:[#allocation2 + $0x8] sm:$0xff]   ;;  %v607_v11 = vld [vmem:[#allocation2] sm:$0xff]  }
  0x1f   :  { %553 = vmatprep.subr.bf16.mxu0 %v672_v0  ;;  %535 = vmatprep.subr.bf16.mxu1 %v672_v0  ;;  %v608_v12 = vld [vmem:[#allocation2 + $0x78] sm:$0xff]   ;;  %v609_v13 = vld [vmem:[#allocation2 + $0x70] sm:$0xff]   ;;  %v610_v14 = vld [vmem:[#allocation2 + $0x68] sm:$0xff]  }
  0x20   :  { %v611_v15 = vld [vmem:[#allocation2 + $0x60] sm:$0xff]   ;;  %v612_v16 = vld [vmem:[#allocation2 + $0x58] sm:$0xff]   ;;  %v613_v17 = vld [vmem:[#allocation2 + $0x50] sm:$0xff]  }
  0x21   :  { %530 = vmatmul.mubr.msk.bf16.vlgmr.msra.gmra.mxu0 %vm72_vm1, %v56_v3  ;;  %v466_v18 = vld [vmem:[%s776_s2] ss:$0 sm:$0xff]  ;;  %v614_v26 = vld [vmem:[#allocation2 + $0x48] sm:$0xff]   ;;  %v616_v28 = vld [vmem:[#allocation4 + $0x38] sm:$0xff]  }
  0x22   :  { %569 = vmatprep.mubr.msk.bf16.mxu0 %vm673_vm0, %v672_v0  ;;  %536 = vmatpush3.bf16.msra.mxu1 %v601_v5  ;;  %v615_v27 = vld [vmem:[#allocation2 + $0x40] sm:$0xff]   ;;  %v617_v29 = vld [vmem:[#allocation4 + $0x30] sm:$0xff]   ;;  %v618_v30 = vld [vmem:[#allocation4 + $0x28] sm:$0xff]  }
  0x23   :  { %537 = vmatprep.subr.bf16.mxu1 %v672_v0  ;;  %554 = vmatpush3.bf16.msra.mxu0 %v608_v12  ;;  %v619_v31 = vld [vmem:[#allocation4 + $0x20] sm:$0xff]   ;;  %v620_v32 = vld [vmem:[#allocation4 + $0x18] sm:$0xff]   ;;  %v621_v33 = vld [vmem:[#allocation4 + $0x10] sm:$0xff]  }
  0x24   :  { %555 = vmatprep.subr.bf16.mxu0 %v672_v0  ;;  %v469_v34 = vld [vmem:[%s778_s4] ss:$0 sm:$0xff]  ;;  %v622_v42 = vld [vmem:[#allocation4 + $0x8] sm:$0xff]   ;;  %v479_v44 = vld [vmem:[%s778_s4 + $0x1] ss:$0 sm:$0xff] }
  0x25   :  { %v623_v43 = vld [vmem:[#allocation4] sm:$0xff]  }
  0x26   :  { %538 = vmatpush3.bf16.msra.mxu1 %v602_v6  ;;  %v488_v52 = vld [vmem:[%s780_s6] ss:$0 sm:$0xff] }
  0x27   :  { %539 = vmatprep.subr.bf16.mxu1 %v672_v0  ;;  %556 = vmatpush3.bf16.msra.mxu0 %v609_v13 }
  0x28   :  { %557 = vmatprep.subr.bf16.mxu0 %v672_v0 }
  0x2a   :  { %540 = vmatpush3.bf16.msra.mxu1 %v603_v7 }
  0x2b   :  { %541 = vmatprep.subr.bf16.mxu1 %v672_v0  ;;  %558 = vmatpush3.bf16.msra.mxu0 %v610_v14 }
  0x2c   :  { %559 = vmatprep.subr.bf16.mxu0 %v672_v0 }
  0x2e   :  { %542 = vmatpush3.bf16.msra.mxu1 %v604_v8 }
  0x2f   :  { %543 = vmatprep.subr.bf16.mxu1 %v672_v0  ;;  %560 = vmatpush3.bf16.msra.mxu0 %v611_v15 }
  0x30   :  { %561 = vmatprep.subr.bf16.mxu0 %v672_v0 }
  0x32   :  { %544 = vmatpush3.bf16.msra.mxu1 %v605_v9 }
  0x33   :  { %545 = vmatprep.subr.bf16.mxu1 %v672_v0  ;;  %562 = vmatpush3.bf16.msra.mxu0 %v612_v16 }
  0x34   :  { %563 = vmatprep.subr.bf16.mxu0 %v672_v0 }
  0x36   :  { %546 = vmatpush3.bf16.msra.mxu1 %v606_v10 }
  0x37   :  { %547 = vmatprep.subr.bf16.mxu1 %v672_v0  ;;  %564 = vmatpush3.bf16.msra.mxu0 %v613_v17 }
  0x38   :  { %565 = vmatprep.subr.bf16.mxu0 %v672_v0 }
  0x3a   :  { %548 = vmatpush3.bf16.msra.mxu1 %v607_v11 }
  0x3b   :  { %573 = vmatprep.subr.bf16.mxu1 %v672_v0  ;;  %566 = vmatpush3.bf16.msra.mxu0 %v614_v26 }
  0x3c   :  { %567 = vmatprep.subr.bf16.mxu0 %v672_v0 }
  0x3f   :  { %568 = vmatpush3.bf16.msra.mxu0 %v615_v27 }
  0xe1   :  { %v110_v19 = vpop.f32.mrf.mxu0 }
  0xe2   :  { %v111_v20 = vadd.f32 %v466_v18, %v110_v19 }
  0xe3   :  { %v531_v21 = vpop.f32.mrf.mxu0 }
  0xe4   :  { %v116_v22 = vmax.f32 %v111_v20, 0.0 }
  0xe5   :  { %v113_v23 = vpop.f32.mrf.mxu0 }
  0xe6   :  { %v117_v24 = vpack.c.bf16 %v116_v22, %v116_v22 }
  0xe7   :  { %v532_v25 = vpop.f32.mrf.mxu0 }
  0xe8   :  { %550 = vmatmul.mubr.bf16.vlgmr.msra.gmra.mxu1 %v117_v24 }
  0xe9   :  { %589 = vmatprep.mubr.msk.bf16.mxu1 %vm673_vm0, %v672_v0  ;;  %574 = vmatpush3.bf16.msra.mxu1 %v616_v28 }
  0xea   :  { %575 = vmatprep.subr.bf16.mxu1 %v672_v0 }
  0xed   :  { %576 = vmatpush3.bf16.msra.mxu1 %v617_v29 }
  0xee   :  { %577 = vmatprep.subr.bf16.mxu1 %v672_v0 }
  0xf1   :  { %578 = vmatpush3.bf16.msra.mxu1 %v618_v30 }
  0xf2   :  { %579 = vmatprep.subr.bf16.mxu1 %v672_v0 }
  0xf5   :  { %580 = vmatpush3.bf16.msra.mxu1 %v619_v31 }
  0xf6   :  { %581 = vmatprep.subr.bf16.mxu1 %v672_v0 }
  0xf9   :  { %582 = vmatpush3.bf16.msra.mxu1 %v620_v32 }
  0xfa   :  { %583 = vmatprep.subr.bf16.mxu1 %v672_v0 }
  0xfd   :  { %584 = vmatpush3.bf16.msra.mxu1 %v621_v33 }
  0xfe   :  { %585 = vmatprep.subr.bf16.mxu1 %v672_v0 }
 0x101   :  { %586 = vmatpush3.bf16.msra.mxu1 %v622_v42 }
 0x102   :  { %587 = vmatprep.subr.bf16.mxu1 %v672_v0 }
 0x105   :  { %588 = vmatpush3.bf16.msra.mxu1 %v623_v43 }
 0x1a8   :  { %v223_v35 = vpop.f32.mrf.mxu1 }
 0x1a9   :  { %v224_v36 = vadd.f32 %v469_v34, %v223_v35 }
 0x1aa   :  { %v551_v37 = vpop.f32.mrf.mxu1 }
 0x1ab   :  { %v229_v38 = vmax.f32 %v224_v36, 0.0 }
 0x1ac   :  { %v226_v39 = vpop.f32.mrf.mxu1 }
 0x1ad   :  { %v230_v40 = vpack.c.bf16 %v229_v38, %v229_v38 }
 0x1ae   :  { %v552_v41 = vpop.f32.mrf.mxu1 }
 0x1af   :  { %570 = vmatmul.mubr.bf16.vlgmr.msra.gmra.mxu0 %v230_v40 }
 0x26f   :  { %v338_v45 = vpop.f32.mrf.mxu0 }
 0x270   :  { %v339_v46 = vadd.f32 %v479_v44, %v338_v45 }
 0x271   :  { %v571_v47 = vpop.f32.mrf.mxu0 }
 0x272   :  { %v344_v48 = vmax.f32 %v339_v46, 0.0 }
 0x273   :  { %v341_v49 = vpop.f32.mrf.mxu0 }
 0x274   :  { %v345_v50 = vpack.c.bf16 %v344_v48, %v344_v48 }
 0x275   :  { %v572_v51 = vpop.f32.mrf.mxu0 }
 0x276   :  { %590 = vmatmul.mubr.bf16.vlgmr.msra.gmra.mxu1 %v345_v50 }
 0x336   :  { %v451_v53 = vpop.f32.mrf.mxu1 }
 0x337   :  { %v452_v54 = vadd.f32 %v488_v52, %v451_v53 }
 0x338   :  { %v591_v55 = vpop.f32.mrf.mxu1 }
 0x339   :  { %v497_v56 = vclamps-f32 %v452_v54, 50.0 }
 0x33a   :  { %v454_v57 = vpop.f32.mrf.mxu1 }
 0x33b   :  { %459 = vst [vmem:[%s781_s7] sm:$0xff] %v497_v56 }
 0x33c   :  { %v592_v58 = vpop.f32.mrf.mxu1 }
 0x33d   :  { %464 = vsyncpa [#allocation3], 1 }
 0x33e   :  { %465 = vsyncpa [#allocation5], 1 }

// kernel: _ffnn_forward_jit.1
= control target key start
LH: loop header
LB: loop body
LE: loop exit
PB: predicated region body
PF: predicated region fallthrough
CT: control target
= control target key end

     0   :  { %12 = vsyncpa [#allocation3], 0  ;;  %s774_s0 = inlined_call_operand.vmem [shape: f32[8,16], index: 0, kind: input, shape index: {}]   ;;  %s775_s1 = inlined_call_operand.vmem [shape: bf16[16,128], index: 1, kind: input, shape index: {}]   ;;  %s776_s2 = inlined_call_operand.vmem [shape: f32[1,128], index: 2, kind: input, shape index: {}]   ;;  %s777_s3 = inlined_call_operand.hbm [shape: bf16[2,128,128], index: 3, kind: input, shape index: {}]   ;;  %s778_s4 = inlined_call_operand.vmem [shape: f32[2,1,128], index: 4, kind: input, shape index: {}]   ;;  %s779_s5 = inlined_call_operand.hbm [shape: bf16[128,128], index: 5, kind: input, shape index: {}]   ;;  %s780_s6 = inlined_call_operand.vmem [shape: f32[1,128], index: 6, kind: input, shape index: {}]   ;;  %s781_s7 = inlined_call_operand.vmem [shape: f32[8,128], index: 7, kind: output, shape index: {}]  }
   0x1   :  { %13 = vsyncpa [#allocation5], 0  ;;  %s668_s24 = smov [#allocation2]  }
   0x2   :  { %s25_s25 = sshll.u32 %s668_s24, 4  ;;  %s26_s25 = int_to_ptr.vmem [resolvable:$true] %s25_s25 }
   0x3   :  { %s632_s26 = scalar_lea.vmem %s26_s25, 2048  ;;  %p637_p1 = scmp.lt.s32.totalorder %s26_s25, %s26_s25 }
   0x4   :  { %p633_p0 = scmp.ne.s32.totalorder %s26_s25, %s632_s26  ;;  %p638_p2 = scmp.lt.s32.totalorder %s632_s26, %s632_s26 }
   0x6   :  { %p639_p3 = por %p638_p2, %p637_p1 }
   0x8   :  { %p640_p4 = pnand %p639_p3, %p633_p0 }
   0xa   :  { %643 = shalt.err (!%p640_p4)
}
   0xb   :  { %s669_s27 = smov 64   ;;  %s670_s28 = smov 4  }
   0xc   :  { %31 = dma.hbm_to_vmem [thread:$0]  %s777_s3, 2048, %s26_s25, [#allocation3], %s669_s27, %s669_s27, %s670_s28  }
   0xd   :  { %s671_s8 = smov [#allocation4]  }
   0xe   :  { %s39_s9 = sshll.u32 %s671_s8, 4  ;;  %s40_s9 = int_to_ptr.vmem [resolvable:$true] %s39_s9 }
   0xf   :  { %s652_s10 = scalar_lea.vmem %s40_s9, 1024  ;;  %p657_p6 = scmp.lt.s32.totalorder %s40_s9, %s40_s9 }
  0x10   :  { %p653_p5 = scmp.ne.s32.totalorder %s40_s9, %s652_s10  ;;  %p658_p7 = scmp.lt.s32.totalorder %s652_s10, %s652_s10 }
  0x12   :  { %p659_p8 = por %p658_p7, %p657_p6 }
  0x14   :  { %p660_p9 = pnand %p659_p8, %p653_p5 }
  0x16   :  { %663 = shalt.err (!%p660_p9)
}
  0x17   :  { %45 = dma.hbm_to_vmem [thread:$0]  %s779_s5, 1024, %s40_s9, [#allocation5], %s669_s27, %s669_s27, %s670_s28  }
  0x18   :  { %664 = dma.done.wait [#allocation3], 2048  }
  0x19   :  { %665 = vsyncadd [#allocation3], 4294965248 }
  0x1a   :  { %666 = dma.done.wait [#allocation5], 1024  }
  0x1b   :  { %667 = vsyncadd [#allocation5], 4294966272  ;;  %v672_v0 = vmov 0.0   ;;  %vm673_vm0 = vmmov 0   ;;  %v599_v1 = vld [vmem:[%s775_s1] sm:$0xff]   ;;  %vm72_vm1 = vcmask 130048  }
  0x1c   :  { %527 = vmatprep.subr.bf16.mxu0 %v672_v0  ;;  %529 = vmatprep.mubr.msk.bf16.mxu0 %vm673_vm0, %v672_v0  ;;  %v55_v2 = vld [vmem:[%s774_s0] sm:$0xff]  ;;  %v600_v4 = vld [vmem:[#allocation2 + $0x38] sm:$0xff]   ;;  %v601_v5 = vld [vmem:[#allocation2 + $0x30] sm:$0xff]  }
  0x1d   :  { %533 = vmatprep.subr.bf16.mxu1 %v672_v0  ;;  %549 = vmatprep.mubr.msk.bf16.mxu1 %vm673_vm0, %v672_v0  ;;  %v56_v3 = vpack.c.bf16 %v55_v2, %v55_v2  ;;  %v602_v6 = vld [vmem:[#allocation2 + $0x28] sm:$0xff]   ;;  %v603_v7 = vld [vmem:[#allocation2 + $0x20] sm:$0xff]   ;;  %v604_v8 = vld [vmem:[#allocation2 + $0x18] sm:$0xff]  }
  0x1e   :  { %528 = vmatpush3.bf16.msra.mxu0 %v599_v1  ;;  %534 = vmatpush3.bf16.msra.mxu1 %v600_v4  ;;  %v605_v9 = vld [vmem:[#allocation2 + $0x10] sm:$0xff]   ;;  %v606_v10 = vld [vmem:[#allocation2 + $0x8] sm:$0xff]   ;;  %v607_v11 = vld [vmem:[#allocation2] sm:$0xff]  }
  0x1f   :  { %553 = vmatprep.subr.bf16.mxu0 %v672_v0  ;;  %535 = vmatprep.subr.bf16.mxu1 %v672_v0  ;;  %v608_v12 = vld [vmem:[#allocation2 + $0x78] sm:$0xff]   ;;  %v609_v13 = vld [vmem:[#allocation2 + $0x70] sm:$0xff]   ;;  %v610_v14 = vld [vmem:[#allocation2 + $0x68] sm:$0xff]  }
  0x20   :  { %v611_v15 = vld [vmem:[#allocation2 + $0x60] sm:$0xff]   ;;  %v612_v16 = vld [vmem:[#allocation2 + $0x58] sm:$0xff]   ;;  %v613_v17 = vld [vmem:[#allocation2 + $0x50] sm:$0xff]  }
  0x21   :  { %530 = vmatmul.mubr.msk.bf16.vlgmr.msra.gmra.mxu0 %vm72_vm1, %v56_v3  ;;  %v466_v18 = vld [vmem:[%s776_s2] ss:$0 sm:$0xff]  ;;  %v614_v26 = vld [vmem:[#allocation2 + $0x48] sm:$0xff]   ;;  %v616_v28 = vld [vmem:[#allocation4 + $0x38] sm:$0xff]  }
  0x22   :  { %569 = vmatprep.mubr.msk.bf16.mxu0 %vm673_vm0, %v672_v0  ;;  %536 = vmatpush3.bf16.msra.mxu1 %v601_v5  ;;  %v615_v27 = vld [vmem:[#allocation2 + $0x40] sm:$0xff]   ;;  %v617_v29 = vld [vmem:[#allocation4 + $0x30] sm:$0xff]   ;;  %v618_v30 = vld [vmem:[#allocation4 + $0x28] sm:$0xff]  }
  0x23   :  { %537 = vmatprep.subr.bf16.mxu1 %v672_v0  ;;  %554 = vmatpush3.bf16.msra.mxu0 %v608_v12  ;;  %v619_v31 = vld [vmem:[#allocation4 + $0x20] sm:$0xff]   ;;  %v620_v32 = vld [vmem:[#allocation4 + $0x18] sm:$0xff]   ;;  %v621_v33 = vld [vmem:[#allocation4 + $0x10] sm:$0xff]  }
  0x24   :  { %555 = vmatprep.subr.bf16.mxu0 %v672_v0  ;;  %v469_v34 = vld [vmem:[%s778_s4] ss:$0 sm:$0xff]  ;;  %v622_v42 = vld [vmem:[#allocation4 + $0x8] sm:$0xff]   ;;  %v479_v44 = vld [vmem:[%s778_s4 + $0x1] ss:$0 sm:$0xff] }
  0x25   :  { %v623_v43 = vld [vmem:[#allocation4] sm:$0xff]  }
  0x26   :  { %538 = vmatpush3.bf16.msra.mxu1 %v602_v6  ;;  %v488_v52 = vld [vmem:[%s780_s6] ss:$0 sm:$0xff] }
  0x27   :  { %539 = vmatprep.subr.bf16.mxu1 %v672_v0  ;;  %556 = vmatpush3.bf16.msra.mxu0 %v609_v13 }
  0x28   :  { %557 = vmatprep.subr.bf16.mxu0 %v672_v0 }
  0x2a   :  { %540 = vmatpush3.bf16.msra.mxu1 %v603_v7 }
  0x2b   :  { %541 = vmatprep.subr.bf16.mxu1 %v672_v0  ;;  %558 = vmatpush3.bf16.msra.mxu0 %v610_v14 }
  0x2c   :  { %559 = vmatprep.subr.bf16.mxu0 %v672_v0 }
  0x2e   :  { %542 = vmatpush3.bf16.msra.mxu1 %v604_v8 }
  0x2f   :  { %543 = vmatprep.subr.bf16.mxu1 %v672_v0  ;;  %560 = vmatpush3.bf16.msra.mxu0 %v611_v15 }
  0x30   :  { %561 = vmatprep.subr.bf16.mxu0 %v672_v0 }
  0x32   :  { %544 = vmatpush3.bf16.msra.mxu1 %v605_v9 }
  0x33   :  { %545 = vmatprep.subr.bf16.mxu1 %v672_v0  ;;  %562 = vmatpush3.bf16.msra.mxu0 %v612_v16 }
  0x34   :  { %563 = vmatprep.subr.bf16.mxu0 %v672_v0 }
  0x36   :  { %546 = vmatpush3.bf16.msra.mxu1 %v606_v10 }
  0x37   :  { %547 = vmatprep.subr.bf16.mxu1 %v672_v0  ;;  %564 = vmatpush3.bf16.msra.mxu0 %v613_v17 }
  0x38   :  { %565 = vmatprep.subr.bf16.mxu0 %v672_v0 }
  0x3a   :  { %548 = vmatpush3.bf16.msra.mxu1 %v607_v11 }
  0x3b   :  { %573 = vmatprep.subr.bf16.mxu1 %v672_v0  ;;  %566 = vmatpush3.bf16.msra.mxu0 %v614_v26 }
  0x3c   :  { %567 = vmatprep.subr.bf16.mxu0 %v672_v0 }
  0x3f   :  { %568 = vmatpush3.bf16.msra.mxu0 %v615_v27 }
  0xe1   :  { %v110_v19 = vpop.f32.mrf.mxu0 }
  0xe2   :  { %v111_v20 = vadd.f32 %v466_v18, %v110_v19 }
  0xe3   :  { %v531_v21 = vpop.f32.mrf.mxu0 }
  0xe4   :  { %v116_v22 = vmax.f32 %v111_v20, 0.0 }
  0xe5   :  { %v113_v23 = vpop.f32.mrf.mxu0 }
  0xe6   :  { %v117_v24 = vpack.c.bf16 %v116_v22, %v116_v22 }
  0xe7   :  { %v532_v25 = vpop.f32.mrf.mxu0 }
  0xe8   :  { %550 = vmatmul.mubr.bf16.vlgmr.msra.gmra.mxu1 %v117_v24 }
  0xe9   :  { %589 = vmatprep.mubr.msk.bf16.mxu1 %vm673_vm0, %v672_v0  ;;  %574 = vmatpush3.bf16.msra.mxu1 %v616_v28 }
  0xea   :  { %575 = vmatprep.subr.bf16.mxu1 %v672_v0 }
  0xed   :  { %576 = vmatpush3.bf16.msra.mxu1 %v617_v29 }
  0xee   :  { %577 = vmatprep.subr.bf16.mxu1 %v672_v0 }
  0xf1   :  { %578 = vmatpush3.bf16.msra.mxu1 %v618_v30 }
  0xf2   :  { %579 = vmatprep.subr.bf16.mxu1 %v672_v0 }
  0xf5   :  { %580 = vmatpush3.bf16.msra.mxu1 %v619_v31 }
  0xf6   :  { %581 = vmatprep.subr.bf16.mxu1 %v672_v0 }
  0xf9   :  { %582 = vmatpush3.bf16.msra.mxu1 %v620_v32 }
  0xfa   :  { %583 = vmatprep.subr.bf16.mxu1 %v672_v0 }
  0xfd   :  { %584 = vmatpush3.bf16.msra.mxu1 %v621_v33 }
  0xfe   :  { %585 = vmatprep.subr.bf16.mxu1 %v672_v0 }
 0x101   :  { %586 = vmatpush3.bf16.msra.mxu1 %v622_v42 }
 0x102   :  { %587 = vmatprep.subr.bf16.mxu1 %v672_v0 }
 0x105   :  { %588 = vmatpush3.bf16.msra.mxu1 %v623_v43 }
 0x1a8   :  { %v223_v35 = vpop.f32.mrf.mxu1 }
 0x1a9   :  { %v224_v36 = vadd.f32 %v469_v34, %v223_v35 }
 0x1aa   :  { %v551_v37 = vpop.f32.mrf.mxu1 }
 0x1ab   :  { %v229_v38 = vmax.f32 %v224_v36, 0.0 }
 0x1ac   :  { %v226_v39 = vpop.f32.mrf.mxu1 }
 0x1ad   :  { %v230_v40 = vpack.c.bf16 %v229_v38, %v229_v38 }
 0x1ae   :  { %v552_v41 = vpop.f32.mrf.mxu1 }
 0x1af   :  { %570 = vmatmul.mubr.bf16.vlgmr.msra.gmra.mxu0 %v230_v40 }
 0x26f   :  { %v338_v45 = vpop.f32.mrf.mxu0 }
 0x270   :  { %v339_v46 = vadd.f32 %v479_v44, %v338_v45 }
 0x271   :  { %v571_v47 = vpop.f32.mrf.mxu0 }
 0x272   :  { %v344_v48 = vmax.f32 %v339_v46, 0.0 }
 0x273   :  { %v341_v49 = vpop.f32.mrf.mxu0 }
 0x274   :  { %v345_v50 = vpack.c.bf16 %v344_v48, %v344_v48 }
 0x275   :  { %v572_v51 = vpop.f32.mrf.mxu0 }
 0x276   :  { %590 = vmatmul.mubr.bf16.vlgmr.msra.gmra.mxu1 %v345_v50 }
 0x336   :  { %v451_v53 = vpop.f32.mrf.mxu1 }
 0x337   :  { %v452_v54 = vadd.f32 %v488_v52, %v451_v53 }
 0x338   :  { %v591_v55 = vpop.f32.mrf.mxu1 }
 0x339   :  { %v497_v56 = vclamps-f32 %v452_v54, 50.0 }
 0x33a   :  { %v454_v57 = vpop.f32.mrf.mxu1 }
 0x33b   :  { %459 = vst [vmem:[%s781_s7] sm:$0xff] %v497_v56 }
 0x33c   :  { %v592_v58 = vpop.f32.mrf.mxu1 }
 0x33d   :  { %464 = vsyncpa [#allocation3], 1 }
 0x33e   :  { %465 = vsyncpa [#allocation5], 1 }

</bundles_post_ra>
